<compile_context>
chip_gen: v7x
topology: tpu7x:2x2x1
jax: 0.10.0
libtpu: 0.0.40
codegen_flags: <defaults>
</compile_context>

<pallas_src>
import functools

import jax
import jax.numpy as jnp
from jax.experimental import pallas as pl
from jax.experimental.pallas import tpu as pltpu


def _round_up(n: int, m: int) -> int:
    return ((n + m - 1) // m) * m


def _mlp_kernel(x_ref, w1_ref, b1_ref, w2_ref, b2_ref, o_ref, acc_ref):
    k = pl.program_id(1)

    @pl.when(k == 0)
    def _init():
        acc_ref[...] = jnp.zeros_like(acc_ref)

    # Cast the activation tile to the matmul compute dtype on-chip (no
    # wrapper-side cast / padded HBM copy).
    x = x_ref[...].astype(w1_ref.dtype)
    # layer1 slab: (tb, in) @ (in, tk) with f32 accumulation on the MXU.
    h = jnp.dot(x, w1_ref[...], preferred_element_type=jnp.float32)
    # f32 epilogue: bias + sigmoid (exp goes to the EUP slot).
    h = jax.nn.sigmoid(h + b1_ref[...])
    # layer2 slab: (tb, tk) @ (tk, in), accumulated over hidden tiles.
    acc_ref[...] += jnp.dot(h.astype(w2_ref.dtype), w2_ref[...],
                            preferred_element_type=jnp.float32)

    @pl.when(k == pl.num_programs(1) - 1)
    def _finalize():
        o_ref[...] = (acc_ref[...] + b2_ref[...]).astype(o_ref.dtype)


def prepare_params(w1, b1, w2, b2, compute_dtype=jnp.bfloat16):
    """One-time parameter prep (do OUTSIDE the per-step hot path).

    PyTorch Linear layout:  w1: (hidden, in)  b1: (hidden,)
                            w2: (in, hidden)  b2: (in,)
    Returns pre-transposed params with the hidden dim zero-padded to a
    multiple of 128 (lane-dense intermediate + clean K tiling):
      w1_t: (in, hid_p) compute_dtype     b1_p: (1, hid_p) f32
      w2_t: (hid_p, in) compute_dtype     b2_p: (1, in)    f32
    Zero padding is safe: padded hidden columns of W1^T are zero, so the
    sigmoid(0)=0.5 values in padded hidden lanes multiply zero rows of W2^T
    and contribute nothing.  bf16 is the recommended compute dtype on all
    generations (v5e/v6e/v7x MXU peak is bf16); the epilogue is f32 anyway.
    """
    hid, in_dim = w1.shape
    hid_p = _round_up(hid, 128)

    w1_t = jnp.zeros((in_dim, hid_p), compute_dtype)
    w1_t = w1_t.at[:, :hid].set(jnp.transpose(w1).astype(compute_dtype))
    w2_t = jnp.zeros((hid_p, in_dim), compute_dtype)
    w2_t = w2_t.at[:hid, :].set(jnp.transpose(w2).astype(compute_dtype))
    b1_p = jnp.zeros((1, hid_p), jnp.float32).at[0, :hid].set(b1.astype(jnp.float32))
    b2_p = b2.astype(jnp.float32).reshape(1, in_dim)
    return w1_t, b1_p, w2_t, b2_p


@functools.partial(jax.jit,
                   static_argnames=("block_batch", "block_hidden", "out_dtype"))
def nonlinear_mlp(x, params, block_batch=512, block_hidden=512, out_dtype=None):
    """x: (B, input_dim); params: output of prepare_params()."""
    w1_t, b1_p, w2_t, b2_p = params
    B, in_dim = x.shape
    in_w, hid_p = w1_t.shape
    assert in_w == in_dim, "x feature dim must match prepared W1"
    out_dtype = x.dtype if out_dtype is None else out_dtype

    # Batch tile: multiple of 8 sublanes (block_batch default 512 is a
    # multiple of 256 -> MXU-native M). Ragged last block handled by Pallas.
    tb = min(block_batch, _round_up(B, 8))

    # Hidden ("K") tile: whole hidden dim when small, else the largest
    # multiple of 128 <= block_hidden that divides hid_p (hid_p is a multiple
    # of 128 so 128 always works). Bounds resident weights for v7x VMEM.
    if hid_p <= block_hidden:
        tk = hid_p
    else:
        tk = max(block_hidden - block_hidden % 128, 128)
        while hid_p % tk:
            tk -= 128
    num_k = hid_p // tk

    grid = (pl.cdiv(B, tb), num_k)

    # Constant-index (resident) weights only need one buffer; K-tiled weights
    # keep default double buffering so the next slab prefetches.
    w_mode = pl.Buffered(1) if num_k == 1 else None

    x_itm = jnp.dtype(x.dtype).itemsize
    w_itm = jnp.dtype(w1_t.dtype).itemsize
    o_itm = jnp.dtype(out_dtype).itemsize
    n_wbuf = 1 if num_k == 1 else 2

    # VMEM footprint: double-buffered x/out tiles, (single- or double-)
    # buffered weight slabs, biases, f32 accumulator scratch; +50% headroom,
    # capped safely below v7x's 64 MiB physical VMEM.
    footprint = (
        2 * tb * in_dim * x_itm
        + 2 * tb * in_dim * o_itm
        + n_wbuf * 2 * in_dim * tk * w_itm
        + n_wbuf * tk * 4
        + in_dim * 4
        + tb * in_dim * 4
    )
    vmem_limit = min(int(footprint * 1.5) + (4 << 20), 56 * 1024 * 1024)

    cost = pl.CostEstimate(
        flops=4 * B * in_dim * hid_p,          # two matmuls
        transcendentals=B * hid_p,             # sigmoid
        bytes_accessed=(B * in_dim * x_itm
                        + 2 * in_dim * hid_p * w_itm
                        + (hid_p + in_dim) * 4
                        + B * in_dim * o_itm),
    )

    return pl.pallas_call(
        _mlp_kernel,
        out_shape=jax.ShapeDtypeStruct((B, in_dim), out_dtype),
        grid_spec=pltpu.PrefetchScalarGridSpec(
            num_scalar_prefetch=0,
            grid=grid,
            in_specs=[
                # activations: tiled along batch only -> pipelined DMA
                pl.BlockSpec((tb, in_dim), lambda i, k: (i, 0)),
                # layer-1 weight / bias slabs (tiled along hidden)
                pl.BlockSpec((in_dim, tk), lambda i, k: (0, k),
                             pipeline_mode=w_mode),
                pl.BlockSpec((1, tk), lambda i, k: (0, k),
                             pipeline_mode=w_mode),
                # layer-2 weight slab (tiled along hidden)
                pl.BlockSpec((tk, in_dim), lambda i, k: (k, 0),
                             pipeline_mode=w_mode),
                # layer-2 bias: always constant -> single buffer
                pl.BlockSpec((1, in_dim), lambda i, k: (0, 0),
                             pipeline_mode=pl.Buffered(1)),
            ],
            out_specs=pl.BlockSpec((tb, in_dim), lambda i, k: (i, 0)),
            scratch_shapes=[pltpu.VMEM((tb, in_dim), jnp.float32)],
        ),
        compiler_params=pltpu.CompilerParams(
            dimension_semantics=("parallel", "arbitrary"),
            vmem_limit_bytes=vmem_limit,
        ),
        cost_estimate=cost,
    )(x, w1_t, b1_p, w2_t, b2_p)


def init_params(key, input_dim, hidden_dim, dtype=jnp.float32):
    """PyTorch nn.Linear default init: U(-1/sqrt(fan_in), 1/sqrt(fan_in))."""
    k1, k2, k3, k4 = jax.random.split(key, 4)
    bound1 = 1.0 / jnp.sqrt(input_dim)
    bound2 = 1.0 / jnp.sqrt(hidden_dim)
    w1 = jax.random.uniform(k1, (hidden_dim, input_dim), dtype, -bound1, bound1)
    b1 = jax.random.uniform(k2, (hidden_dim,), dtype, -bound1, bound1)
    w2 = jax.random.uniform(k3, (input_dim, hidden_dim), dtype, -bound2, bound2)
    b2 = jax.random.uniform(k4, (input_dim,), dtype, -bound2, bound2)
    return w1, b1, w2, b2


if __name__ == "__main__":
    key = jax.random.PRNGKey(0)
    kx, kp = jax.random.split(key)

    batch, input_dim, hidden_dim = 8, 32, 64
    x = jax.random.normal(kx, (batch, input_dim), jnp.float32)
    w1, b1, w2, b2 = init_params(kp, input_dim, hidden_dim)

    # Reference (same math as the PyTorch forward), in f32.
    ref = jax.nn.sigmoid(x @ w1.T + b1) @ w2.T + b2

    # --- f32 compute path ---
    params_f32 = prepare_params(w1, b1, w2, b2, compute_dtype=jnp.float32)
    out_f32 = jax.block_until_ready(nonlinear_mlp(x, params_f32))
    assert out_f32.shape == (batch, input_dim)
    assert jnp.allclose(out_f32, ref, atol=1e-4, rtol=1e-4), "f32 path mismatch"

    # --- bf16 compute path (recommended default): looser tolerance ---
    params_bf16 = prepare_params(w1, b1, w2, b2, compute_dtype=jnp.bfloat16)
    out_bf16 = jax.block_until_ready(nonlinear_mlp(x, params_bf16))
    assert out_bf16.shape == (batch, input_dim)
    assert jnp.allclose(out_bf16, ref, atol=3e-2, rtol=3e-2), "bf16 path mismatch"

    # --- ragged batch (exercises Pallas partial last block, no wrapper pad) ---
    x2 = jax.random.normal(kx, (24, input_dim), jnp.float32)
    ref2 = jax.nn.sigmoid(x2 @ w1.T + b1) @ w2.T + b2
    out2 = jax.block_until_ready(nonlinear_mlp(x2, params_f32, block_batch=16))
    assert out2.shape == (24, input_dim)
    assert jnp.allclose(out2, ref2, atol=1e-4, rtol=1e-4), "ragged batch mismatch"

    print("KERNEL_OK")
</pallas_src>

<mosaic_0001>
module attributes {stable_mosaic.version = 11 : i64} {
  func.func @_mlp_kernel(%arg0: i32, %arg1: i32, %arg2: memref<8x32xf32, #tpu.memory_space<vmem>>, %arg3: memref<32x128xf32, #tpu.memory_space<vmem>>, %arg4: memref<1x128xf32, #tpu.memory_space<vmem>>, %arg5: memref<128x32xf32, #tpu.memory_space<vmem>>, %arg6: memref<1x32xf32, #tpu.memory_space<vmem>>, %arg7: memref<8x32xf32, #tpu.memory_space<vmem>>, %arg8: memref<8x32xf32, #tpu.memory_space<vmem>>) attributes {dimension_semantics = [#tpu.dimension_semantics<parallel>, #tpu.dimension_semantics<arbitrary>], iteration_bounds = array<i64: 1, 1>, scalar_prefetch = 0 : i64, scratch_operands = 1 : i64, tpu.core_type = #tpu.core_type<tc>, window_params = [{transform_indices = @transform_0, window_bounds = array<i64: 8, 32>}, {pipeline_mode = #tpu.pipeline_mode<synchronous>, transform_indices = @transform_1, window_bounds = array<i64: 32, 128>}, {pipeline_mode = #tpu.pipeline_mode<synchronous>, transform_indices = @transform_2, window_bounds = array<i64: 1, 128>}, {pipeline_mode = #tpu.pipeline_mode<synchronous>, transform_indices = @transform_3, window_bounds = array<i64: 128, 32>}, {pipeline_mode = #tpu.pipeline_mode<synchronous>, transform_indices = @transform_4, window_bounds = array<i64: 1, 32>}, {transform_indices = @transform_5, window_bounds = array<i64: 8, 32>}]} {
    %c0_i32 = arith.constant 0 : i32
    %0 = arith.cmpi eq, %arg1, %c0_i32 : i32
    %1 = arith.extui %0 : i1 to i32
    %c0_i32_0 = arith.constant 0 : i32
    %2 = arith.cmpi ne, %1, %c0_i32_0 : i32
    scf.if %2 {
      %cst_16 = arith.constant 0.000000e+00 : f32
      %22 = vector.broadcast %cst_16 : f32 to vector<8x32xf32>
      %c0_17 = arith.constant 0 : index
      %c0_18 = arith.constant 0 : index
      %23 = vector.load %arg8[%c0_17, %c0_18] : memref<8x32xf32, #tpu.memory_space<vmem>>, vector<8x32xf32>
      tpu.vector_store %arg8[%c0_17, %c0_18], %22 {strides = array<i32>} : memref<8x32xf32, #tpu.memory_space<vmem>>, vector<8x32xf32>,
    } else {
    }
    %c0 = arith.constant 0 : index
    %c0_1 = arith.constant 0 : index
    %3 = vector.load %arg2[%c0, %c0_1] : memref<8x32xf32, #tpu.memory_space<vmem>>, vector<8x32xf32>
    %c0_2 = arith.constant 0 : index
    %c0_3 = arith.constant 0 : index
    %4 = vector.load %arg3[%c0_2, %c0_3] : memref<32x128xf32, #tpu.memory_space<vmem>>, vector<32x128xf32>
    %cst = arith.constant dense<0.000000e+00> : vector<8x128xf32>
    %5 = tpu.matmul %3, %4, %cst {dimension_numbers = #tpu.dot_dimension_numbers<[1], [0], [0], [1], [0, 0, 1, 1], [], []>} : vector<8x32xf32>, vector<32x128xf32>, vector<8x128xf32> -> vector<8x128xf32>
    %c0_4 = arith.constant 0 : index
    %c0_5 = arith.constant 0 : index
    %6 = vector.load %arg4[%c0_4, %c0_5] : memref<1x128xf32, #tpu.memory_space<vmem>>, vector<1x128xf32>
    %7 = vector.broadcast %6 : vector<1x128xf32> to vector<8x128xf32>
    %8 = arith.addf %5, %7 : vector<8x128xf32>
    %9 = arith.negf %8 : vector<8x128xf32>
    %10 = math.exp %9 : vector<8x128xf32>
    %cst_6 = arith.constant 1.000000e+00 : f32
    %11 = vector.broadcast %cst_6 : f32 to vector<8x128xf32>
    %12 = arith.addf %11, %10 : vector<8x128xf32>
    %13 = arith.divf %11, %12 : vector<8x128xf32>
    %c0_7 = arith.constant 0 : index
    %c0_8 = arith.constant 0 : index
    %14 = vector.load %arg8[%c0_7, %c0_8] : memref<8x32xf32, #tpu.memory_space<vmem>>, vector<8x32xf32>
    %c0_9 = arith.constant 0 : index
    %c0_10 = arith.constant 0 : index
    %15 = vector.load %arg5[%c0_9, %c0_10] : memref<128x32xf32, #tpu.memory_space<vmem>>, vector<128x32xf32>
    %cst_11 = arith.constant dense<0.000000e+00> : vector<8x32xf32>
    %16 = tpu.matmul %13, %15, %cst_11 {dimension_numbers = #tpu.dot_dimension_numbers<[1], [0], [0], [1], [0, 0, 1, 1], [], []>} : vector<8x128xf32>, vector<128x32xf32>, vector<8x32xf32> -> vector<8x32xf32>
    %17 = arith.addf %14, %16 : vector<8x32xf32>
    %c0_12 = arith.constant 0 : index
    %c0_13 = arith.constant 0 : index
    %18 = vector.load %arg8[%c0_12, %c0_13] : memref<8x32xf32, #tpu.memory_space<vmem>>, vector<8x32xf32>
    tpu.vector_store %arg8[%c0_12, %c0_13], %17 {strides = array<i32>} : memref<8x32xf32, #tpu.memory_space<vmem>>, vector<8x32xf32>,
    %c0_i32_14 = arith.constant 0 : i32
    %19 = arith.cmpi eq, %arg1, %c0_i32_14 : i32
    %20 = arith.extui %19 : i1 to i32
    %c0_i32_15 = arith.constant 0 : i32
    %21 = arith.cmpi ne, %20, %c0_i32_15 : i32
    scf.if %21 {
      %c0_16 = arith.constant 0 : index
      %c0_17 = arith.constant 0 : index
      %22 = vector.load %arg8[%c0_16, %c0_17] : memref<8x32xf32, #tpu.memory_space<vmem>>, vector<8x32xf32>
      %c0_18 = arith.constant 0 : index
      %c0_19 = arith.constant 0 : index
      %23 = vector.load %arg6[%c0_18, %c0_19] : memref<1x32xf32, #tpu.memory_space<vmem>>, vector<1x32xf32>
      %24 = vector.broadcast %23 : vector<1x32xf32> to vector<8x32xf32>
      %25 = arith.addf %22, %24 : vector<8x32xf32>
      %c0_20 = arith.constant 0 : index
      %c0_21 = arith.constant 0 : index
      %26 = vector.load %arg7[%c0_20, %c0_21] : memref<8x32xf32, #tpu.memory_space<vmem>>, vector<8x32xf32>
      tpu.vector_store %arg7[%c0_20, %c0_21], %25 {strides = array<i32>} : memref<8x32xf32, #tpu.memory_space<vmem>>, vector<8x32xf32>,
    } else {
    }
    return
  }
  func.func @transform_0(%arg0: i32, %arg1: i32) -> (i32, i32) {
    %c0_i32 = arith.constant 0 : i32
    %c0_i32_0 = arith.constant 0 : i32
    return %arg0, %c0_i32 : i32, i32
  }
  func.func @transform_1(%arg0: i32, %arg1: i32) -> (i32, i32) {
    %c0_i32 = arith.constant 0 : i32
    %c0_i32_0 = arith.constant 0 : i32
    return %c0_i32, %arg1 : i32, i32
  }
  func.func @transform_2(%arg0: i32, %arg1: i32) -> (i32, i32) {
    %c0_i32 = arith.constant 0 : i32
    %c0_i32_0 = arith.constant 0 : i32
    return %c0_i32, %arg1 : i32, i32
  }
  func.func @transform_3(%arg0: i32, %arg1: i32) -> (i32, i32) {
    %c0_i32 = arith.constant 0 : i32
    %c0_i32_0 = arith.constant 0 : i32
    return %arg1, %c0_i32 : i32, i32
  }
  func.func @transform_4(%arg0: i32, %arg1: i32) -> (i32, i32) {
    %c0_i32 = arith.constant 0 : i32
    %c0_i32_0 = arith.constant 0 : i32
    %c0_i32_1 = arith.constant 0 : i32
    return %c0_i32, %c0_i32_0 : i32, i32
  }
  func.func @transform_5(%arg0: i32, %arg1: i32) -> (i32, i32) {
    %c0_i32 = arith.constant 0 : i32
    %c0_i32_0 = arith.constant 0 : i32
    return %arg0, %c0_i32 : i32, i32
  }
}

</mosaic_0001>

<bundles_post_ra>
// kernel: nonlinear_mlp.1
= control target key start
LH: loop header
LB: loop body
LE: loop exit
PB: predicated region body
PF: predicated region fallthrough
CT: control target
= control target key end

     0   :  { %v369_v3 = vmov 0.0|0.0   ;;  %vm370_vm0 = vmmov 0   ;;  %v371_v6 = vmov 0.0   ;;  %vm25_vm1 = vcmask 261120   ;;  %s488_s0 = inlined_call_operand.vmem [shape: f32[8,32], index: 0, kind: input, shape index: {}]   ;;  %s489_s1 = inlined_call_operand.vmem [shape: f32[32,128], index: 1, kind: input, shape index: {}]   ;;  %s490_s2 = inlined_call_operand.vmem [shape: f32[1,128], index: 2, kind: input, shape index: {}]   ;;  %s491_s3 = inlined_call_operand.vmem [shape: f32[128,32], index: 3, kind: input, shape index: {}]   ;;  %s492_s4 = inlined_call_operand.vmem [shape: f32[1,32], index: 4, kind: input, shape index: {}]   ;;  %s493_s5 = inlined_call_operand.hbm [shape: f32[8,32], index: 5, kind: output, shape index: {}]  }
   0x1   :  { %v28_v0 = vld [vmem:[%s489_s1] sm:$0xff]  ;;  %v29_v1 = vld [vmem:[%s489_s1 + $0x8] sm:$0xff]  ;;  %v30_v2 = vld [vmem:[%s489_s1 + $0x10] sm:$0xff]  ;;  %307 = vmatprep.subr.bf16.mxu0 %v369_v3  ;;  %269 = vmatprep.mubr.msk.f32.mxu0 %vm370_vm0, %v371_v6  ;;  %26 = vst.msk [vmem:[#allocation2] sm:$0xff] %vm25_vm1, %v371_v6 }
   0x2   :  { %v308_v4 = vpack.c.bf16 %v29_v1, %v28_v0  ;;  %v31_v5 = vld [vmem:[%s489_s1 + $0x18] sm:$0xff]  ;;  %v120_v7 = vld [vmem:[%s491_s3] sm:$0xff]  ;;  %313 = vmatprep.subr.bf16.mxu1 %v369_v3  ;;  %v121_v8 = vld [vmem:[%s491_s3 + $0x8] sm:$0xff]  ;;  %304 = vmatprep.mubr.msk.f32.mxu1 %vm370_vm0, %v371_v6 }
   0x3   :  { %10 = vsyncpa [#allocation4], 0  ;;  %v311_v9 = vpack.c.bf16 %v31_v5, %v30_v2  ;;  %v314_v10 = vpack.c.bf16 %v121_v8, %v120_v7  ;;  %v27_v11 = vld [vmem:[%s488_s0] sm:$0xff]  ;;  %v122_v12 = vld [vmem:[%s491_s3 + $0x10] sm:$0xff] }
   0x4   :  { %309 = vmatpush3.bf16.msra.mxu0 %v308_v4  ;;  %v123_v13 = vld [vmem:[%s491_s3 + $0x18] sm:$0xff]  ;;  %v124_v15 = vld [vmem:[%s491_s3 + $0x20] sm:$0xff]  ;;  %v125_v16 = vld [vmem:[%s491_s3 + $0x28] sm:$0xff] }
   0x5   :  { %310 = vmatprep.subr.bf16.mxu0 %v369_v3  ;;  %315 = vmatpush3.bf16.msra.mxu1 %v314_v10  ;;  %v317_v14 = vpack.c.bf16 %v123_v13, %v122_v12  ;;  %v320_v17 = vpack.c.bf16 %v125_v16, %v124_v15  ;;  %v126_v18 = vld [vmem:[%s491_s3 + $0x30] sm:$0xff]  ;;  %v127_v19 = vld [vmem:[%s491_s3 + $0x38] sm:$0xff]  ;;  %v128_v21 = vld [vmem:[%s491_s3 + $0x40] sm:$0xff] }
   0x6   :  { %316 = vmatprep.subr.bf16.mxu1 %v369_v3  ;;  %v323_v20 = vpack.c.bf16 %v127_v19, %v126_v18  ;;  %v129_v22 = vld [vmem:[%s491_s3 + $0x48] sm:$0xff]  ;;  %v130_v24 = vld [vmem:[%s491_s3 + $0x50] sm:$0xff]  ;;  %v131_v25 = vld [vmem:[%s491_s3 + $0x58] sm:$0xff] }
   0x7   :  { %v326_v23 = vpack.c.bf16 %v129_v22, %v128_v21  ;;  %v329_v26 = vpack.c.bf16 %v131_v25, %v130_v24  ;;  %v132_v27 = vld [vmem:[%s491_s3 + $0x60] sm:$0xff]  ;;  %v133_v28 = vld [vmem:[%s491_s3 + $0x68] sm:$0xff]  ;;  %v134_v30 = vld [vmem:[%s491_s3 + $0x70] sm:$0xff] }
   0x8   :  { %312 = vmatpush3.bf16.msra.mxu0 %v311_v9  ;;  %v332_v29 = vpack.c.bf16 %v133_v28, %v132_v27  ;;  %v135_v31 = vld [vmem:[%s491_s3 + $0x78] sm:$0xff]  ;;  %v235_v33 = vld [vmem:[%s490_s2] ss:$0 sm:$0xff]  ;;  %s372_s2 = smov [#allocation3]  }
   0x9   :  { %318 = vmatpush3.bf16.msra.mxu1 %v317_v14  ;;  %v335_v32 = vpack.c.bf16 %v135_v31, %v134_v30  ;;  %v119_v41 = vld [vmem:[#allocation2] sm:$0xff]  ;;  %s227_s10 = sshll.u32 %s372_s2, 4  ;;  %s228_s10 = int_to_ptr.vmem [resolvable:$true] %s227_s10 }
   0xa   :  { %319 = vmatprep.subr.bf16.mxu1 %v369_v3  ;;  %v238_v45 = vld [vmem:[%s492_s4] ss:$0 sm:$0xff]  ;;  %s345_s11 = scalar_lea.vmem %s228_s10, 128  ;;  %p350_p1 = scmp.lt.s32.totalorder %s228_s10, %s228_s10 }
   0xb   :  { %270 = vmatmul.mubr.msk.f32.vlgmr.msra.gmra.mrb[0].mxu0 %vm25_vm1, %v27_v11  ;;  %p346_p0 = scmp.ne.s32.totalorder %s228_s10, %s345_s11  ;;  %p351_p2 = scmp.lt.s32.totalorder %s345_s11, %s345_s11 }
   0xd   :  { %321 = vmatpush3.bf16.msra.mxu1 %v320_v17  ;;  %p352_p3 = por %p351_p2, %p350_p1 }
   0xe   :  { %322 = vmatprep.subr.bf16.mxu1 %v369_v3 }
   0xf   :  { %p353_p4 = pnand %p352_p3, %p346_p0 }
  0x11   :  { %324 = vmatpush3.bf16.msra.mxu1 %v323_v20 }
  0x12   :  { %325 = vmatprep.subr.bf16.mxu1 %v369_v3 }
  0x15   :  { %327 = vmatpush3.bf16.msra.mxu1 %v326_v23 }
  0x16   :  { %328 = vmatprep.subr.bf16.mxu1 %v369_v3 }
  0x19   :  { %330 = vmatpush3.bf16.msra.mxu1 %v329_v26 }
  0x1a   :  { %331 = vmatprep.subr.bf16.mxu1 %v369_v3 }
  0x1d   :  { %333 = vmatpush3.bf16.msra.mxu1 %v332_v29 }
  0x1e   :  { %334 = vmatprep.subr.bf16.mxu1 %v369_v3 }
  0x21   :  { %336 = vmatpush3.bf16.msra.mxu1 %v335_v32 }
  0xde   :  { %v109_v34 = vpop.f32.mrb[0].mxu0 }
  0xdf   :  { %v110_v35 = vadd.f32 %v235_v33, %v109_v34  ;;  %v271_v36 = vpop.f32.mrb[1].mxu0 }
  0xe1   :  { %v237_v37 = vmul.f32 -1.442695, %v110_v35 }
  0xe3   :  { %341 = vpow2.f32 %v237_v37 }
  0xed   :  { %v342_v38 = vpop.eup %341 }
  0xee   :  { %v116_v39 = vadd.f32 1.0, %v342_v38 }
  0xf0   :  { %343 = vrcp.f32 %v116_v39 }
  0xfa   :  { %v344_v40 = vpop.eup %343 }
  0xfb   :  { %305 = vmatmul.mubr.f32.vlgmr.msra.gmra.mrb[0].mxu1 %v344_v40 }
 0x1ce   :  { %v202_v42 = vpop.f32.mrb[0].mxu1 }
 0x1cf   :  { %v206_v43 = vadd.f32 %v202_v42, %v119_v41  ;;  %v306_v44 = vpop.f32.mrb[1].mxu1 }
 0x1d1   :  { %207 = vst.msk [vmem:[#allocation2] sm:$0xff] %vm25_vm1, %v206_v43 }
 0x1d8   :  { %v211_v46 = vld [vmem:[#allocation2] sm:$0xff] }
 0x1d9   :  { %v219_v47 = vadd.f32 %v238_v45, %v211_v46 }
 0x1db   :  { %220 = vst.msk [vmem:[#allocation3] sm:$0xff] %vm25_vm1, %v219_v47 }
 0x1dc   :  { %356 = shalt.err (!%p353_p4)
}
 0x1dd   :  { %s357_s0 = scalar_lea.hbm %s493_s5, 128 }
 0x1de   :  { %p358_p5 = scmp.ne.s32.totalorder %s493_s5, %s357_s0  ;;  %p361_p6 = scmp.lt.u32.totalorder %s357_s0, %s493_s5 }
 0x1e0   :  { %p363_p7 = pnand %p361_p6, %p358_p5 }
 0x1e2   :  { %366 = shalt.err (!%p363_p7)
}
 0x1e3   :  { %230 = dma.vmem_to_hbm [thread:$0]  %s228_s10, 128, %s493_s5, [#allocation4]  }
 0x1e4   :  { %367 = dma.done.wait [#allocation4], 128  }
 0x1e5   :  { %368 = vsyncadd [#allocation4], 4294967168 }
 0x1e6   :  { %234 = vsyncpa [#allocation4], 1 }

</bundles_post_ra>
